<compile_context>
chip_gen: v7x
topology: tpu7x:2x2x1
jax: 0.10.0
libtpu: 0.0.40
codegen_flags: <defaults>
</compile_context>

<pallas_src>
import jax
import jax.numpy as jnp
from jax.experimental import pallas as pl
from jax.experimental.pallas import tpu as pltpu


def _round_up(v, m):
    return ((v + m - 1) // m) * m


def _cdiv(a, b):
    return -(-a // b)


def _sublane_multiple(dtype):
    # f32 -> 8 rows/vreg, bf16 -> 16, int8/fp8 -> 32 (sub-32-bit packs sublanes).
    return {4: 8, 2: 16, 1: 32}.get(jnp.dtype(dtype).itemsize, 8)


def _vmem_budget_bytes():
    """~80% of per-core VMEM; conservative 64 MiB capacity fallback (v7x-safe)."""
    cap = None
    try:
        cap = int(pltpu.get_tpu_info().vmem_capacity_bytes)
    except Exception:
        cap = None
    if not cap or cap <= 0:
        cap = 64 << 20
    return int(cap * 0.80)


# --------------------------------------------------------------------------- #
# Kernels (specialized at trace time on whether K is reduced over the grid).
# --------------------------------------------------------------------------- #
def _sage_kernel_single_k(x_ref, agg_ref, w_ref, o_ref):
    # x_ref/agg_ref: [tm, in_size]; w_ref: [2, in_size, tn]; o_ref: [tm, tn]
    acc = jnp.dot(x_ref[...], w_ref[0], preferred_element_type=jnp.float32)
    acc = acc + jnp.dot(agg_ref[...], w_ref[1], preferred_element_type=jnp.float32)
    o_ref[...] = jnp.maximum(acc, 0.0).astype(o_ref.dtype)


def _sage_kernel_multi_k(x_ref, agg_ref, w_ref, o_ref, acc_ref):
    # K-tiled reduction: assign on k==0 (no zero-init store), accumulate after.
    k = pl.program_id(2)
    s = jnp.dot(x_ref[...], w_ref[0], preferred_element_type=jnp.float32)
    s = s + jnp.dot(agg_ref[...], w_ref[1], preferred_element_type=jnp.float32)

    @pl.when(k == 0)
    def _assign():
        acc_ref[...] = s

    @pl.when(k != 0)
    def _accum():
        acc_ref[...] += s

    @pl.when(k == pl.num_programs(2) - 1)
    def _finalize():
        o_ref[...] = jnp.maximum(acc_ref[...], 0.0).astype(o_ref.dtype)


# --------------------------------------------------------------------------- #
# Wrapper
# --------------------------------------------------------------------------- #
def sage_conv(x, aggregate_x, weight, *, tile_m=None, tile_n=None, tile_k=None):
    """relu(cat([x, aggregate_x], dim=1) @ weight) via a tiled Pallas TPU kernel."""
    n_nodes, in_size = x.shape
    two_in, out_size = weight.shape
    assert two_in == 2 * in_size, "weight must have shape [2*in_size, out_size]"
    assert aggregate_x.shape == (n_nodes, in_size)

    # Compute dtype follows x (f32 accumulation is inside the kernel, so bf16
    # activations/weights are a pure HBM-bandwidth win - recommended on v5e).
    in_dtype = x.dtype
    out_dtype = x.dtype
    aggregate_x = aggregate_x.astype(in_dtype)
    weight = weight.astype(in_dtype)

    in_b = jnp.dtype(in_dtype).itemsize
    out_b = jnp.dtype(out_dtype).itemsize
    sub = _sublane_multiple(in_dtype)

    budget = _vmem_budget_bytes()
    w_budget = budget // 2

    def w_tile_bytes(tk, tn):
        # (2, tk, tn) weight tile, double-buffered by the pipeline.
        return 2 * (2 * tk * tn * in_b)

    # ---- tn: prefer gn == 1 (weight fetched from HBM exactly once) -----------
    if tile_n is not None:
        tn = int(tile_n)
        assert tn == out_size or tn % 128 == 0, \
            "tile_n must equal out_size or be a multiple of 128"
        tn = min(tn, out_size)
    elif out_size <= 256 or w_tile_bytes(in_size, out_size) <= w_budget:
        tn = out_size
    else:
        tn = max(128, (w_budget // w_tile_bytes(in_size, 128)) * 128)
        tn = min(tn, _round_up(out_size, 128))
        if tn >= out_size:
            tn = out_size
    gn = _cdiv(out_size, tn)

    # ---- tk: prefer gk == 1 (no accumulator, no K re-streaming) --------------
    if tile_k is not None:
        tk = min(int(tile_k), in_size)
        if tk < in_size:
            assert tk % 128 == 0, "tile_k must be a multiple of 128 when < in_size"
    elif w_tile_bytes(in_size, tn) <= w_budget:
        tk = in_size
    else:
        tk = max(128, (w_budget // w_tile_bytes(128, tn)) * 128)
        tk = min(tk, _round_up(in_size, 128))
        if tk >= in_size:
            tk = in_size
    gk = _cdiv(in_size, tk)
    pad_k = (gk > 1) and (in_size % tk != 0)

    # ---- tm: biggest node tile the VMEM budget allows (mem-bound kernel) -----
    per_row = (2 * 2 * tk * in_b          # x + agg tiles, double-buffered
               + 2 * tn * out_b           # output tile, double-buffered
               + (tn * 4 if gk > 1 else 0))  # f32 accumulator row
    avail = max(budget - w_tile_bytes(tk, tn), per_row * sub)
    tm_budget = max(sub, (avail // per_row) // sub * sub)
    if tile_m is not None:
        tm = _round_up(int(tile_m), sub)
    else:
        tm = min(tm_budget, 1024)
    tm = max(sub, min(tm, _round_up(n_nodes, sub)))
    if tile_m is None and tm >= n_nodes and n_nodes > 2 * sub:
        # Small graph: split into >= 2 node tiles so v7x's 2nd TensorCore works.
        tm = _round_up(_cdiv(n_nodes, 2), sub)
    gm = _cdiv(n_nodes, tm)

    # ---- inputs (no M padding; weight viewed as [2, in_size, out_size]) ------
    x_in = x
    agg_in = aggregate_x
    w_in = weight.reshape(2, in_size, out_size)
    if pad_k:
        # Rare huge-in_size case: zero-pad K of all operands so edge-block
        # garbage never multiplies into valid output columns.
        k_total = gk * tk
        x_in = jnp.pad(x_in, ((0, 0), (0, k_total - in_size)))
        agg_in = jnp.pad(agg_in, ((0, 0), (0, k_total - in_size)))
        w_in = jnp.pad(w_in, ((0, 0), (0, k_total - in_size), (0, 0)))

    # ---- kernel specialization / scratch --------------------------------------
    if gk == 1:
        kernel = _sage_kernel_single_k
        scratch = []
    else:
        kernel = _sage_kernel_multi_k
        scratch = [pltpu.VMEM((tm, tn), jnp.float32)]

    vmem_need = (2 * 2 * tm * tk * in_b
                 + w_tile_bytes(tk, tn)
                 + 2 * tm * tn * out_b
                 + (tm * tn * 4 if gk > 1 else 0))
    vmem_limit = int(min(budget, max(32 << 20, int(1.25 * vmem_need))))

    # Weight is streamed once when its block index is constant over the grid,
    # otherwise once per node tile.
    w_stream = 2 * in_size * out_size * in_b * (1 if (gn == 1 and gk == 1) else gm)
    cost = pl.CostEstimate(
        flops=2 * n_nodes * (2 * in_size) * out_size,
        transcendentals=0,
        bytes_accessed=int(2 * n_nodes * in_size * in_b
                           + w_stream
                           + n_nodes * out_size * out_b),
    )

    return pl.pallas_call(
        kernel,
        out_shape=jax.ShapeDtypeStruct((n_nodes, out_size), out_dtype),
        grid_spec=pltpu.PrefetchScalarGridSpec(
            num_scalar_prefetch=0,
            grid=(gm, gn, gk),
            in_specs=[
                pl.BlockSpec((tm, tk), lambda i, j, k: (i, k)),      # x tile
                pl.BlockSpec((tm, tk), lambda i, j, k: (i, k)),      # agg tile
                pl.BlockSpec((2, tk, tn), lambda i, j, k: (0, k, j)),  # weight
            ],
            out_specs=pl.BlockSpec((tm, tn), lambda i, j, k: (i, j)),
            scratch_shapes=scratch,
        ),
        compiler_params=pltpu.CompilerParams(
            dimension_semantics=("parallel", "parallel", "arbitrary"),
            vmem_limit_bytes=vmem_limit,
        ),
        cost_estimate=cost,
    )(x_in, agg_in, w_in)


def xavier_uniform(key, shape, dtype=jnp.float32):
    # torch.nn.init.xavier_uniform_ for a 2-D tensor [fan_in, fan_out]
    fan_in, fan_out = shape
    bound = (6.0 / (fan_in + fan_out)) ** 0.5
    return jax.random.uniform(key, shape, dtype=dtype, minval=-bound, maxval=bound)


if __name__ == "__main__":
    key = jax.random.PRNGKey(0)
    k1, k2, k3, k4, k5, k6 = jax.random.split(key, 6)

    # Case 1: small graph, ragged N and non-128 out_size (no wrapper padding).
    N, in_size, out_size = 200, 32, 48
    x = jax.random.normal(k1, (N, in_size), dtype=jnp.float32)
    aggregate_x = jax.random.normal(k2, (N, in_size), dtype=jnp.float32)
    weight = xavier_uniform(k3, (2 * in_size, out_size))

    out = jax.block_until_ready(sage_conv(x, aggregate_x, weight))
    ref = jnp.maximum(jnp.concatenate([x, aggregate_x], axis=1) @ weight, 0.0)
    assert out.shape == (N, out_size)
    assert jnp.allclose(out, ref, atol=1e-4, rtol=1e-4), "f32 mismatch vs reference"

    # Case 2: K-tiled reduction path (gk > 1, f32 accumulator across K steps).
    N2, in2, out2 = 160, 256, 128
    x2 = jax.random.normal(k4, (N2, in2), dtype=jnp.float32)
    agg2 = jax.random.normal(k5, (N2, in2), dtype=jnp.float32)
    w2 = xavier_uniform(k6, (2 * in2, out2))
    out_k = jax.block_until_ready(sage_conv(x2, agg2, w2, tile_k=128))
    ref2 = jnp.maximum(jnp.concatenate([x2, agg2], axis=1) @ w2, 0.0)
    assert jnp.allclose(out_k, ref2, atol=1e-4, rtol=1e-4), "K-tiled mismatch"

    # Case 3: bf16 activations/weights (recommended on v5e; f32 accumulation).
    out_bf16 = jax.block_until_ready(
        sage_conv(x.astype(jnp.bfloat16),
                  aggregate_x.astype(jnp.bfloat16),
                  weight.astype(jnp.bfloat16)))
    assert jnp.allclose(out_bf16.astype(jnp.float32), ref, atol=0.1, rtol=0.1), \
        "bf16 mismatch vs f32 reference"

    print("KERNEL_OK")
</pallas_src>

<mosaic_0001>
module attributes {stable_mosaic.version = 11 : i64} {
  func.func @_sage_kernel_single_k(%arg0: i32, %arg1: i32, %arg2: i32, %arg3: memref<104x32xf32, #tpu.memory_space<vmem>>, %arg4: memref<104x32xf32, #tpu.memory_space<vmem>>, %arg5: memref<2x32x48xf32, #tpu.memory_space<vmem>>, %arg6: memref<104x48xf32, #tpu.memory_space<vmem>>) attributes {dimension_semantics = [#tpu.dimension_semantics<parallel>, #tpu.dimension_semantics<parallel>, #tpu.dimension_semantics<arbitrary>], iteration_bounds = array<i64: 2, 1, 1>, scalar_prefetch = 0 : i64, scratch_operands = 0 : i64, tpu.core_type = #tpu.core_type<tc>, window_params = [{transform_indices = @transform_0, window_bounds = array<i64: 104, 32>}, {transform_indices = @transform_1, window_bounds = array<i64: 104, 32>}, {transform_indices = @transform_2, window_bounds = array<i64: 2, 32, 48>}, {transform_indices = @transform_3, window_bounds = array<i64: 104, 48>}]} {
    %c0 = arith.constant 0 : index
    %c0_0 = arith.constant 0 : index
    %0 = vector.load %arg3[%c0, %c0_0] : memref<104x32xf32, #tpu.memory_space<vmem>>, vector<104x32xf32>
    %c0_1 = arith.constant 0 : index
    %c0_2 = arith.constant 0 : index
    %c0_3 = arith.constant 0 : index
    %1 = vector.load %arg5[%c0_1, %c0_2, %c0_3] : memref<2x32x48xf32, #tpu.memory_space<vmem>>, vector<1x32x48xf32>
    %2 = vector.shape_cast %1 : vector<1x32x48xf32> to vector<32x48xf32>
    %cst = arith.constant dense<0.000000e+00> : vector<104x48xf32>
    %3 = tpu.matmul %0, %2, %cst {dimension_numbers = #tpu.dot_dimension_numbers<[1], [0], [0], [1], [0, 0, 1, 1], [], []>} : vector<104x32xf32>, vector<32x48xf32>, vector<104x48xf32> -> vector<104x48xf32>
    %c0_4 = arith.constant 0 : index
    %c0_5 = arith.constant 0 : index
    %4 = vector.load %arg4[%c0_4, %c0_5] : memref<104x32xf32, #tpu.memory_space<vmem>>, vector<104x32xf32>
    %c1 = arith.constant 1 : index
    %c0_6 = arith.constant 0 : index
    %c0_7 = arith.constant 0 : index
    %5 = vector.load %arg5[%c1, %c0_6, %c0_7] : memref<2x32x48xf32, #tpu.memory_space<vmem>>, vector<1x32x48xf32>
    %6 = vector.shape_cast %5 : vector<1x32x48xf32> to vector<32x48xf32>
    %cst_8 = arith.constant dense<0.000000e+00> : vector<104x48xf32>
    %7 = tpu.matmul %4, %6, %cst_8 {dimension_numbers = #tpu.dot_dimension_numbers<[1], [0], [0], [1], [0, 0, 1, 1], [], []>} : vector<104x32xf32>, vector<32x48xf32>, vector<104x48xf32> -> vector<104x48xf32>
    %8 = arith.addf %3, %7 : vector<104x48xf32>
    %cst_9 = arith.constant 0.000000e+00 : f32
    %9 = vector.broadcast %cst_9 : f32 to vector<104x48xf32>
    %10 = arith.maximumf %8, %9 : vector<104x48xf32>
    %c0_10 = arith.constant 0 : index
    %c0_11 = arith.constant 0 : index
    %11 = vector.load %arg6[%c0_10, %c0_11] : memref<104x48xf32, #tpu.memory_space<vmem>>, vector<104x48xf32>
    tpu.vector_store %arg6[%c0_10, %c0_11], %10 {strides = array<i32>} : memref<104x48xf32, #tpu.memory_space<vmem>>, vector<104x48xf32>,
    return
  }
  func.func @transform_0(%arg0: i32, %arg1: i32, %arg2: i32) -> (i32, i32) {
    %c0_i32 = arith.constant 0 : i32
    return %arg0, %arg2 : i32, i32
  }
  func.func @transform_1(%arg0: i32, %arg1: i32, %arg2: i32) -> (i32, i32) {
    %c0_i32 = arith.constant 0 : i32
    return %arg0, %arg2 : i32, i32
  }
  func.func @transform_2(%arg0: i32, %arg1: i32, %arg2: i32) -> (i32, i32, i32) {
    %c0_i32 = arith.constant 0 : i32
    %c0_i32_0 = arith.constant 0 : i32
    return %c0_i32, %arg2, %arg1 : i32, i32, i32
  }
  func.func @transform_3(%arg0: i32, %arg1: i32, %arg2: i32) -> (i32, i32) {
    %c0_i32 = arith.constant 0 : i32
    return %arg0, %arg1 : i32, i32
  }
}

</mosaic_0001>

<bundles_post_ra>
// kernel: tpu_custom_call.1
= control target key start
LH: loop header
LB: loop body
LE: loop exit
PB: predicated region body
PF: predicated region fallthrough
CT: control target
= control target key end

     0   :  { %s1470_s12 = smov 0   ;;  %s1472_s13 = smov 0   ;;  %s1779_s0 = inlined_call_operand.vmem [shape: f32[200,32], index: 0, kind: input, shape index: {}]   ;;  %s1780_s1 = inlined_call_operand.vmem [shape: f32[200,32], index: 1, kind: input, shape index: {}]   ;;  %s1781_s2 = inlined_call_operand.vmem [shape: f32[2,32,48], index: 2, kind: input, shape index: {}]   ;;  %s1782_s3 = inlined_call_operand.vmem [shape: f32[200,48], index: 3, kind: output, shape index: {}]  }
   0x1   :  { %s1474_s14 = smov 0   ;;  %s1476_s15 = smov 0  }
   0x2   :  { %s1478_s16 = smov 0  }
   0x3 LB: > { %s1026_s17 = sadd.s32 4294967295, %s1413_s16   ;;  %s32_s18 = sadd.s32 1, %s1409_s15  ;;  %s1413_s16 = sphi %s1478_s16, %s13_s16   ;;  %s1409_s15 = sphi %s1476_s15, %s1790_s15   ;;  %s1405_s14 = sphi %s1474_s14, %s1789_s14   ;;  %s1401_s13 = sphi %s1472_s13, %s1788_s13   ;;  %s1397_s12 = sphi %s1470_s12, %s1787_s12  }
   0x4   : > { %p34_p0 = scmp.ge.s32.totalorder %s32_s18, 2  ;;  %s125_s19 = sadd.s32 1, %s1401_s13 }
   0x5   : > { %p135_p1 = scmp.ne.s32.totalorder %s1401_s13, %s1397_s12  ;;  %p136_p2 = scmp.eq.s32.totalorder %s1026_s17, 1 }
   0x6   : > { %s1792_s18 = smov (%p34_p0, %s32_s18), 0  ;;  %p1031_p4 = scmp.ge.s32.totalorder %s1413_s16, 1 }
   0x7   : > { %p1502_p3 = por %p136_p2, %p135_p1  ;;  %s120_s21 = ssub.s32 %s1409_s15, %s1792_s18 }
   0x8   : > { %p212_p5 = scmp.lt.s32.totalorder %s1413_s16, 3  ;;  %p123_p6 = scmp.eq.s32.totalorder %s120_s21, 0 }
   0xa   : > { %p213_p7 = pnand %p1031_p4, %p212_p5 }
   0xb   : > { %s1511_s22 = scalar_select %p123_p6, %s1401_s13, %s125_s19  }
   0xc   : > { %216 = sbr.rel (%p213_p7) target bundleno = 351 (0x15f), region = 32  ;;  %v1034_v0 = vld [vmem:[%s1781_s2 + $0x20] sm:$0xff] (!%p213_p7)  ;;  %v1035_v1 = vld [vmem:[%s1781_s2 + $0x28] sm:$0xff] (!%p213_p7)  ;;  %v1447_v3 = vmov (!%p213_p7), 0.0|0.0   ;;  %v1036_v6 = vld [vmem:[%s1781_s2 + $0x30] sm:$0xff] (!%p213_p7)  ;;  %vm1448_vm0 = vmmov (!%p213_p7), 0  }
   0xd   : > { %v323_v2 = vld [vmem:[%s1781_s2] sm:$0xff] (!%p213_p7)  ;;  %1205 = vmatprep.subr.bf16.mxu1 (!%p213_p7), %v1447_v3  ;;  %1211 = vmatprep.subr.bf16.mxu0 (!%p213_p7), %v1447_v3  ;;  %v1206_v4 = vpack.c.bf16 (!%p213_p7), %v1035_v1, %v1034_v0  ;;  %v324_v5 = vld [vmem:[%s1781_s2 + $0x8] sm:$0xff] (!%p213_p7)  ;;  %v1037_v7 = vld [vmem:[%s1781_s2 + $0x38] sm:$0xff] (!%p213_p7)  ;;  %s1532_s8 = smul.u32 (!%p213_p7), 13, %s1405_s14  ;;  %v1449_v11 = vmov (!%p213_p7), 0.0   ;;  %vm345_vm1 = vcmask (!%p213_p7), 261120  }
   0xe   : > { %v1212_v8 = vpack.c.bf16 (!%p213_p7), %v324_v5, %v323_v2  ;;  %v325_v9 = vld [vmem:[%s1781_s2 + $0x10] sm:$0xff] (!%p213_p7)  ;;  %v326_v10 = vld [vmem:[%s1781_s2 + $0x18] sm:$0xff] (!%p213_p7)  ;;  %1119 = vmatprep.mubr.msk.f32.mxu1 (!%p213_p7), %vm1448_vm0, %v1449_v11  ;;  %1166 = vmatprep.mubr.msk.f32.mxu0 (!%p213_p7), %vm1448_vm0, %v1449_v11  ;;  %v1209_v12 = vpack.c.bf16 (!%p213_p7), %v1037_v7, %v1036_v6  ;;  %s259_s29 = sand.u32 (!%p213_p7), 1, %s1397_s12   ;;  %vm697_vm2 = vcmask (!%p213_p7), 392192  }
   0xf   : > { %1207 = vmatpush3.bf16.msra.mxu1 (!%p213_p7), %v1206_v4  ;;  %p267_p8 = scmp.lt.s32.totalorder (!%p213_p7), %s1532_s8, 24  ;;  %v1215_v13 = vpack.c.bf16 (!%p213_p7), %v326_v10, %v325_v9  ;;  %s1230_s30 = smul.u32 (!%p213_p7), 104, %s259_s29 }
  0x10   : > { %1213 = vmatpush3.bf16.msra.mxu0 (!%p213_p7), %v1212_v8  ;;  %1208 = vmatprep.subr.bf16.mxu1 (!%p213_p7), %v1447_v3 }
  0x11   : > { %1214 = vmatprep.subr.bf16.mxu0 (!%p213_p7), %v1447_v3  ;;  %s1657_s4 = scalar_lea.vmem (!%p213_p7), [#allocation2], %s1230_s30  }
  0x13   : > { %s268_s19 = scalar_select %p267_p8, %s1532_s8, 24  ;;  %1210 = vmatpush3.bf16.msra.mxu1 %v1209_v12 }
  0x14   : > { %1216 = vmatpush3.bf16.msra.mxu0 %v1215_v13  ;;  %s719_s12 = ssub.s32 (%p1502_p3), 25, %s1532_s8  ;;  %s1076_s5 = smul.u32 (%p1502_p3), 104, %s1405_s14 }
  0x15   : > { %s1032_s21 = sshll.u32 %s268_s19, 3  ;;  %p720_p9 = scmp.lt.s32.totalorder (%p1502_p3), %s719_s12, 13 }
  0x16   : > { %s1549_s25 = scalar_lea.vmem %s1780_s1, %s1032_s21  ;;  %s1554_s28 = scalar_lea.vmem %s1779_s0, %s1032_s21 }
  0x17   : > { %v327_v14 = vld [vmem:[%s1549_s25] sm:$0xff]  ;;  %v328_v16 = vld [vmem:[%s1549_s25 + $0x8] sm:$0xff]  ;;  %v329_v18 = vld [vmem:[%s1549_s25 + $0x10] sm:$0xff]  ;;  %s1692_s9 = scalar_lea.vmem (%p1502_p3), %s1782_s3, %s1076_s5  }
  0x18   : > { %v310_v15 = vld [vmem:[%s1554_s28] sm:$0xff]  ;;  %1120 = vmatmul.mubr.msk.f32.vlgmr.msra.gmra.mrb[0].mxu1 %vm345_vm1, %v327_v14  ;;  %v311_v17 = vld [vmem:[%s1554_s28 + $0x8] sm:$0xff]  ;;  %v312_v19 = vld [vmem:[%s1554_s28 + $0x10] sm:$0xff] }
  0x19   : > { %1167 = vmatmul.mubr.msk.f32.vlgmr.msra.gmra.mrb[0].mxu0 %vm345_vm1, %v310_v15  ;;  %1122 = vmatprep.mubr.msk.f32.mxu1 %vm1448_vm0, %v1449_v11  ;;  %v330_v20 = vld [vmem:[%s1549_s25 + $0x18] sm:$0xff]  ;;  %v331_v22 = vld [vmem:[%s1549_s25 + $0x20] sm:$0xff]  ;;  %v332_v24 = vld [vmem:[%s1549_s25 + $0x28] sm:$0xff] }
  0x1a   : > { %1169 = vmatprep.mubr.msk.f32.mxu0 %vm1448_vm0, %v1449_v11  ;;  %v313_v21 = vld [vmem:[%s1554_s28 + $0x18] sm:$0xff]  ;;  %v314_v23 = vld [vmem:[%s1554_s28 + $0x20] sm:$0xff]  ;;  %v315_v25 = vld [vmem:[%s1554_s28 + $0x28] sm:$0xff] }
  0x1b   : > { %v333_v26 = vld [vmem:[%s1549_s25 + $0x30] sm:$0xff]  ;;  %v334_v28 = vld [vmem:[%s1549_s25 + $0x38] sm:$0xff]  ;;  %v335_v30 = vld [vmem:[%s1549_s25 + $0x40] sm:$0xff] }
  0x1c   : > { %1123 = vmatmul.mubr.msk.f32.gmra.mrb[2].mxu1 %vm345_vm1, %v328_v16  ;;  %v316_v27 = vld [vmem:[%s1554_s28 + $0x30] sm:$0xff]  ;;  %v317_v29 = vld [vmem:[%s1554_s28 + $0x38] sm:$0xff]  ;;  %v318_v31 = vld [vmem:[%s1554_s28 + $0x40] sm:$0xff] }
  0x1d   : > { %1170 = vmatmul.mubr.msk.f32.gmra.mrb[2].mxu0 %vm345_vm1, %v311_v17  ;;  %1125 = vmatprep.mubr.msk.f32.mxu1 %vm1448_vm0, %v1449_v11  ;;  %v336_v32 = vld [vmem:[%s1549_s25 + $0x48] sm:$0xff]  ;;  %v337_v34 = vld [vmem:[%s1549_s25 + $0x50] sm:$0xff]  ;;  %v338_v36 = vld [vmem:[%s1549_s25 + $0x58] sm:$0xff] }
  0x1e   : > { %1172 = vmatprep.mubr.msk.f32.mxu0 %vm1448_vm0, %v1449_v11  ;;  %v319_v33 = vld [vmem:[%s1554_s28 + $0x48] sm:$0xff]  ;;  %v320_v35 = vld [vmem:[%s1554_s28 + $0x50] sm:$0xff]  ;;  %v321_v37 = vld [vmem:[%s1554_s28 + $0x58] sm:$0xff] }
  0x1f   : > { %v339_v38 = vld [vmem:[%s1549_s25 + $0x60] sm:$0xff] }
  0x20   : > { %1126 = vmatmul.mubr.msk.f32.gmra.mrb[4].mxu1 %vm345_vm1, %v329_v18  ;;  %v322_v39 = vld [vmem:[%s1554_s28 + $0x60] sm:$0xff] }
  0x21   : > { %1173 = vmatmul.mubr.msk.f32.gmra.mrb[4].mxu0 %vm345_vm1, %v312_v19  ;;  %1128 = vmatprep.mubr.msk.f32.mxu1 %vm1448_vm0, %v1449_v11 }
  0x22   : > { %1175 = vmatprep.mubr.msk.f32.mxu0 %vm1448_vm0, %v1449_v11 }
  0x24   : > { %1129 = vmatmul.mubr.msk.f32.gmra.mrb[6].mxu1 %vm345_vm1, %v330_v20 }
  0x25   : > { %1176 = vmatmul.mubr.msk.f32.gmra.mrb[6].mxu0 %vm345_vm1, %v313_v21  ;;  %1131 = vmatprep.mubr.msk.f32.mxu1 %vm1448_vm0, %v1449_v11 }
  0x26   : > { %1178 = vmatprep.mubr.msk.f32.mxu0 %vm1448_vm0, %v1449_v11 }
  0x28   : > { %1132 = vmatmul.mubr.msk.f32.gmra.mrb[8].mxu1 %vm345_vm1, %v331_v22 }
  0x29   : > { %1179 = vmatmul.mubr.msk.f32.gmra.mrb[8].mxu0 %vm345_vm1, %v314_v23  ;;  %1134 = vmatprep.mubr.msk.f32.mxu1 %vm1448_vm0, %v1449_v11 }
  0x2a   : > { %1181 = vmatprep.mubr.msk.f32.mxu0 %vm1448_vm0, %v1449_v11 }
  0x2c   : > { %1135 = vmatmul.mubr.msk.f32.gmra.mrb[10].mxu1 %vm345_vm1, %v332_v24 }
  0x2d   : > { %1182 = vmatmul.mubr.msk.f32.gmra.mrb[10].mxu0 %vm345_vm1, %v315_v25  ;;  %1137 = vmatprep.mubr.msk.f32.mxu1 %vm1448_vm0, %v1449_v11 }
  0x2e   : > { %1184 = vmatprep.mubr.msk.f32.mxu0 %vm1448_vm0, %v1449_v11 }
  0x30   : > { %1138 = vmatmul.mubr.msk.f32.gmra.mrb[12].mxu1 %vm345_vm1, %v333_v26 }
  0x31   : > { %1185 = vmatmul.mubr.msk.f32.gmra.mrb[12].mxu0 %vm345_vm1, %v316_v27  ;;  %1140 = vmatprep.mubr.msk.f32.mxu1 %vm1448_vm0, %v1449_v11 }
  0x32   : > { %1187 = vmatprep.mubr.msk.f32.mxu0 %vm1448_vm0, %v1449_v11 }
  0x34   : > { %1141 = vmatmul.mubr.msk.f32.gmra.mrb[14].mxu1 %vm345_vm1, %v334_v28 }
  0x35   : > { %1188 = vmatmul.mubr.msk.f32.gmra.mrb[14].mxu0 %vm345_vm1, %v317_v29  ;;  %1143 = vmatprep.mubr.msk.f32.mxu1 %vm1448_vm0, %v1449_v11 }
  0x36   : > { %1190 = vmatprep.mubr.msk.f32.mxu0 %vm1448_vm0, %v1449_v11 }
  0x38   : > { %1144 = vmatmul.mubr.msk.f32.gmra.mrb[16].mxu1 %vm345_vm1, %v335_v30 }
  0x39   : > { %1191 = vmatmul.mubr.msk.f32.gmra.mrb[16].mxu0 %vm345_vm1, %v318_v31  ;;  %1146 = vmatprep.mubr.msk.f32.mxu1 %vm1448_vm0, %v1449_v11 }
  0x3a   : > { %1193 = vmatprep.mubr.msk.f32.mxu0 %vm1448_vm0, %v1449_v11 }
  0x3c   : > { %1147 = vmatmul.mubr.msk.f32.gmra.mrb[18].mxu1 %vm345_vm1, %v336_v32 }
  0x3d   : > { %1194 = vmatmul.mubr.msk.f32.gmra.mrb[18].mxu0 %vm345_vm1, %v319_v33  ;;  %1149 = vmatprep.mubr.msk.f32.mxu1 %vm1448_vm0, %v1449_v11 }
  0x3e   : > { %1196 = vmatprep.mubr.msk.f32.mxu0 %vm1448_vm0, %v1449_v11 }
  0x40   : > { %1150 = vmatmul.mubr.msk.f32.gmra.mrb[20].mxu1 %vm345_vm1, %v337_v34 }
  0x41   : > { %1197 = vmatmul.mubr.msk.f32.gmra.mrb[20].mxu0 %vm345_vm1, %v320_v35  ;;  %1152 = vmatprep.mubr.msk.f32.mxu1 %vm1448_vm0, %v1449_v11 }
  0x42   : > { %1199 = vmatprep.mubr.msk.f32.mxu0 %vm1448_vm0, %v1449_v11 }
  0x44   : > { %1153 = vmatmul.mubr.msk.f32.gmra.mrb[22].mxu1 %vm345_vm1, %v338_v36 }
  0x45   : > { %1200 = vmatmul.mubr.msk.f32.gmra.mrb[22].mxu0 %vm345_vm1, %v321_v37  ;;  %1155 = vmatprep.mubr.msk.f32.mxu1 %vm1448_vm0, %v1449_v11 }
  0x46   : > { %1202 = vmatprep.mubr.msk.f32.mxu0 %vm1448_vm0, %v1449_v11 }
  0x48   : > { %1156 = vmatmul.mubr.msk.f32.gmra.mrb[24].mxu1 %vm345_vm1, %v339_v38 }
  0x49   : > { %1203 = vmatmul.mubr.msk.f32.gmra.mrb[24].mxu0 %vm345_vm1, %v322_v39 }
  0xeb   : > { %v451_v40 = vpop.f32.mrb[0].mxu1 }
  0xec   : > { %v620_v41 = vpop.f32.mrb[0].mxu0  ;;  %v1121_v42 = vpop.f32.mrb[1].mxu1 }
  0xed   : > { %v621_v43 = vadd.f32 %v620_v41, %v451_v40  ;;  %v1168_v44 = vpop.f32.mrb[1].mxu0 }
  0xef   : > { %v684_v45 = vmax.f32 %v621_v43, 0.0  ;;  %v456_v46 = vpop.f32.mrb[2].mxu1 }
  0xf0   : > { %v625_v47 = vpop.f32.mrb[2].mxu0  ;;  %v1124_v48 = vpop.f32.mrb[3].mxu1 }
  0xf1   : > { %698 = vst.msk [vmem:[%s1657_s4] sm:$0xff] %vm697_vm2, %v684_v45  ;;  %v626_v49 = vadd.f32 %v625_v47, %v456_v46  ;;  %v1171_v50 = vpop.f32.mrb[3].mxu0 }
  0xf3   : > { %v685_v51 = vmax.f32 %v626_v49, 0.0  ;;  %v461_v52 = vpop.f32.mrb[4].mxu1 }
  0xf4   : > { %v630_v53 = vpop.f32.mrb[4].mxu0  ;;  %v1127_v54 = vpop.f32.mrb[5].mxu1 }
  0xf5   : > { %699 = vst.msk [vmem:[%s1657_s4 + $0x8] sm:$0xff] %vm697_vm2, %v685_v51  ;;  %v631_v55 = vadd.f32 %v630_v53, %v461_v52  ;;  %v1174_v56 = vpop.f32.mrb[5].mxu0 }
  0xf7   : > { %v686_v57 = vmax.f32 %v631_v55, 0.0  ;;  %v466_v58 = vpop.f32.mrb[6].mxu1 }
  0xf8   : > { %v635_v59 = vpop.f32.mrb[6].mxu0  ;;  %v1130_v60 = vpop.f32.mrb[7].mxu1 }
  0xf9   : > { %700 = vst.msk [vmem:[%s1657_s4 + $0x10] sm:$0xff] %vm697_vm2, %v686_v57  ;;  %v636_v61 = vadd.f32 %v635_v59, %v466_v58  ;;  %v1177_v62 = vpop.f32.mrb[7].mxu0 }
  0xfb   : > { %v687_v63 = vmax.f32 %v636_v61, 0.0  ;;  %v471_v0 = vpop.f32.mrb[8].mxu1 }
  0xfc   : > { %v640_v1 = vpop.f32.mrb[8].mxu0  ;;  %v1133_v2 = vpop.f32.mrb[9].mxu1 }
  0xfd   : > { %701 = vst.msk [vmem:[%s1657_s4 + $0x18] sm:$0xff] %vm697_vm2, %v687_v63  ;;  %v641_v3 = vadd.f32 %v640_v1, %v471_v0  ;;  %v1180_v4 = vpop.f32.mrb[9].mxu0 }
  0xff   : > { %v688_v5 = vmax.f32 %v641_v3, 0.0  ;;  %v476_v6 = vpop.f32.mrb[10].mxu1 }
 0x100   : > { %v645_v7 = vpop.f32.mrb[10].mxu0  ;;  %v1136_v8 = vpop.f32.mrb[11].mxu1 }
 0x101   : > { %702 = vst.msk [vmem:[%s1657_s4 + $0x20] sm:$0xff] %vm697_vm2, %v688_v5  ;;  %v646_v9 = vadd.f32 %v645_v7, %v476_v6  ;;  %v1183_v10 = vpop.f32.mrb[11].mxu0 }
 0x103   : > { %v689_v11 = vmax.f32 %v646_v9, 0.0  ;;  %v481_v12 = vpop.f32.mrb[12].mxu1 }
 0x104   : > { %v650_v13 = vpop.f32.mrb[12].mxu0  ;;  %v1139_v14 = vpop.f32.mrb[13].mxu1 }
 0x105   : > { %703 = vst.msk [vmem:[%s1657_s4 + $0x28] sm:$0xff] %vm697_vm2, %v689_v11  ;;  %v651_v15 = vadd.f32 %v650_v13, %v481_v12  ;;  %v1186_v16 = vpop.f32.mrb[13].mxu0 }
 0x107   : > { %v690_v17 = vmax.f32 %v651_v15, 0.0  ;;  %v486_v18 = vpop.f32.mrb[14].mxu1 }
 0x108   : > { %v655_v19 = vpop.f32.mrb[14].mxu0  ;;  %v1142_v20 = vpop.f32.mrb[15].mxu1 }
 0x109   : > { %704 = vst.msk [vmem:[%s1657_s4 + $0x30] sm:$0xff] %vm697_vm2, %v690_v17  ;;  %v656_v21 = vadd.f32 %v655_v19, %v486_v18  ;;  %v1189_v22 = vpop.f32.mrb[15].mxu0 }
 0x10b   : > { %v691_v23 = vmax.f32 %v656_v21, 0.0  ;;  %v491_v24 = vpop.f32.mrb[16].mxu1 }
 0x10c   : > { %v660_v25 = vpop.f32.mrb[16].mxu0  ;;  %v1145_v26 = vpop.f32.mrb[17].mxu1 }
 0x10d   : > { %705 = vst.msk [vmem:[%s1657_s4 + $0x38] sm:$0xff] %vm697_vm2, %v691_v23  ;;  %v661_v27 = vadd.f32 %v660_v25, %v491_v24  ;;  %v1192_v28 = vpop.f32.mrb[17].mxu0 }
 0x10f   : > { %v692_v29 = vmax.f32 %v661_v27, 0.0  ;;  %v496_v30 = vpop.f32.mrb[18].mxu1 }
 0x110   : > { %v665_v31 = vpop.f32.mrb[18].mxu0  ;;  %v1148_v32 = vpop.f32.mrb[19].mxu1 }
 0x111   : > { %706 = vst.msk [vmem:[%s1657_s4 + $0x40] sm:$0xff] %vm697_vm2, %v692_v29  ;;  %v666_v33 = vadd.f32 %v665_v31, %v496_v30  ;;  %v1195_v34 = vpop.f32.mrb[19].mxu0 }
 0x113   : > { %v693_v35 = vmax.f32 %v666_v33, 0.0  ;;  %v501_v36 = vpop.f32.mrb[20].mxu1 }
 0x114   : > { %v670_v37 = vpop.f32.mrb[20].mxu0  ;;  %v1151_v38 = vpop.f32.mrb[21].mxu1 }
 0x115   : > { %707 = vst.msk [vmem:[%s1657_s4 + $0x48] sm:$0xff] %vm697_vm2, %v693_v35  ;;  %v671_v39 = vadd.f32 %v670_v37, %v501_v36  ;;  %v1198_v40 = vpop.f32.mrb[21].mxu0 }
 0x117   : > { %v694_v41 = vmax.f32 %v671_v39, 0.0  ;;  %v506_v42 = vpop.f32.mrb[22].mxu1 }
 0x118   : > { %v675_v43 = vpop.f32.mrb[22].mxu0  ;;  %v1154_v44 = vpop.f32.mrb[23].mxu1 }
 0x119   : > { %708 = vst.msk [vmem:[%s1657_s4 + $0x50] sm:$0xff] %vm697_vm2, %v694_v41  ;;  %v676_v45 = vadd.f32 %v675_v43, %v506_v42  ;;  %v1201_v46 = vpop.f32.mrb[23].mxu0 }
 0x11b   : > { %v695_v47 = vmax.f32 %v676_v45, 0.0  ;;  %v511_v48 = vpop.f32.mrb[24].mxu1  ;;  %717 = sbr.rel (!%p1502_p3) target bundleno = 351 (0x15f), region = 36 }
 0x11c   : > { %v680_v49 = vpop.f32.mrb[24].mxu0  ;;  %v1157_v50 = vpop.f32.mrb[25].mxu1 }
 0x11d   : > { %709 = vst.msk [vmem:[%s1657_s4 + $0x58] sm:$0xff] %vm697_vm2, %v695_v47  ;;  %v681_v51 = vadd.f32 %v680_v49, %v511_v48  ;;  %v1204_v52 = vpop.f32.mrb[25].mxu0 }
 0x11f   : > { %v696_v53 = vmax.f32 %v681_v51, 0.0 }
 0x121   : > { %710 = vst.msk [vmem:[%s1657_s4 + $0x60] sm:$0xff] %vm697_vm2, %v696_v53 }
 0x122   : > { %s1794_s12 = smov (!%p720_p9, %s719_s12), 13 }
 0x123   : > { %s1064_s10 = sshll.u32 %s1794_s12, 7 }
 0x124   : > { %p1067_p10 = scmp.eq.s32.totalorder %s1064_s10, 0 }
 0x125   : > { %1339 = sdivrem.u32 (!%p1067_p10), %s1794_s12, 13 }
 0x126   : > { %729 = sbr.rel (%p1067_p10) target bundleno = 351 (0x15f), region = 40 }
 0x12e   : > { %s1698_s20 = spop.drf %1339 }
 0x12f   : > { %p1068_p11 = scmp.le.s32.totalorder %s1698_s20, 0 }
 0x130   : > { %s1784_s14 = smov (!%p1068_p11), %s1692_s9  ;;  %s1785_s8 = smov (!%p1068_p11), %s1657_s4 }
 0x131   : > { %956 = sbr.rel (%p1068_p11) target bundleno = 322 (0x142), region = 123  ;;  %s1707_s11 = smov (!%p1068_p11), 0  }
 0x132   : > { %s1709_s17 = smov (!%p1068_p11), 0  }
 0x138 LB: >> { %v817_v54 = vld [vmem:[%s1421_s8] sm:$0xff]  ;;  %v819_v55 = vld [vmem:[%s1421_s8 + $0x8] sm:$0xff]  ;;  %v821_v56 = vld [vmem:[%s1421_s8 + $0x10] sm:$0xff]  ;;  %s843_s19 = sadd.s32 1, %s1425_s11  ;;  %s811_s17 = sadd.s32 1, %s1429_s17   ;;  %s1429_s17 = sphi %s1709_s17, %s811_s17   ;;  %s1425_s11 = sphi %s1707_s11, %s1786_s11   ;;  %s1421_s8 = sphi %s1785_s8, %s848_s8   ;;  %s1417_s14 = sphi %s1784_s14, %s849_s14  }
 0x139   : >> { %818 = vst [vmem:[%s1417_s14] sm:$0xff] %v817_v54  ;;  %820 = vst [vmem:[%s1417_s14 + $0x8] sm:$0xff] %v819_v55  ;;  %v823_v57 = vld [vmem:[%s1421_s8 + $0x18] sm:$0xff]  ;;  %v825_v58 = vld [vmem:[%s1421_s8 + $0x20] sm:$0xff]  ;;  %p844_p12 = scmp.ge.s32.totalorder %s843_s19, %s1698_s20  ;;  %p810_p13 = scmp.ge.s32.totalorder %s811_s17, %s1698_s20 }
 0x13a   : >> { %822 = vst [vmem:[%s1417_s14 + $0x10] sm:$0xff] %v821_v56  ;;  %v827_v59 = vld [vmem:[%s1421_s8 + $0x28] sm:$0xff]  ;;  %824 = vst [vmem:[%s1417_s14 + $0x18] sm:$0xff] %v823_v57  ;;  %v829_v60 = vld [vmem:[%s1421_s8 + $0x30] sm:$0xff] }
 0x13b   : >> { %826 = vst [vmem:[%s1417_s14 + $0x20] sm:$0xff] %v825_v58  ;;  %828 = vst [vmem:[%s1417_s14 + $0x28] sm:$0xff] %v827_v59  ;;  %v831_v61 = vld [vmem:[%s1421_s8 + $0x38] sm:$0xff]  ;;  %v833_v62 = vld [vmem:[%s1421_s8 + $0x40] sm:$0xff]  ;;  %s1796_s19 = smov (%p844_p12, %s843_s19), 0  ;;  %813 = sbr.rel (!%p810_p13) target bundleno = 312 (0x138), region = 129 }
 0x13c   : >> { %830 = vst [vmem:[%s1417_s14 + $0x30] sm:$0xff] %v829_v60  ;;  %832 = vst [vmem:[%s1417_s14 + $0x38] sm:$0xff] %v831_v61  ;;  %v835_v63 = vld [vmem:[%s1421_s8 + $0x48] sm:$0xff]  ;;  %v837_v0 = vld [vmem:[%s1421_s8 + $0x50] sm:$0xff]  ;;  %s846_s21 = smul.u32 104, %s1796_s19  ;;  %s1786_s11 = smov %s1796_s19 }
 0x13d   : >> { %834 = vst [vmem:[%s1417_s14 + $0x40] sm:$0xff] %v833_v62  ;;  %v839_v1 = vld [vmem:[%s1421_s8 + $0x58] sm:$0xff]  ;;  %836 = vst [vmem:[%s1417_s14 + $0x48] sm:$0xff] %v835_v63  ;;  %v841_v2 = vld [vmem:[%s1421_s8 + $0x60] sm:$0xff] }
 0x13e   : >> { %838 = vst [vmem:[%s1417_s14 + $0x50] sm:$0xff] %v837_v0  ;;  %840 = vst [vmem:[%s1417_s14 + $0x58] sm:$0xff] %v839_v1  ;;  %s848_s8 = scalar_lea.vmem %s1657_s4, %s846_s21 [#allocation2]  }
 0x13f   : >> { %842 = vst [vmem:[%s1417_s14 + $0x60] sm:$0xff] %v841_v2  ;;  %s849_s14 = scalar_lea.vmem %s1692_s9, %s846_s21  }
 0x142 PF: > { %1341 = sdivrem.u32 %s1794_s12, 13 }
 0x143   : > { %s1069_s23 = smul.u32 104, %s1698_s20 }
 0x145   : > { %s854_s24 = scalar_lea.vmem %s1657_s4, %s1069_s23 [#allocation2]   ;;  %s856_s25 = scalar_lea.vmem %s1692_s9, %s1069_s23  }
 0x14b   : > { %s1342_s26 = spop.drf %1341 }
 0x14c   : > { %p1071_p0 = scmp.le.s32.totalorder %s1342_s26, 0 }
 0x14d   : > { %s1431_s27 = smov (!%p1071_p0), %s856_s25   ;;  %s1435_s28 = smov (!%p1071_p0), %s854_s24  }
 0x14e   : > { %970 = sbr.rel (%p1071_p0) target bundleno = 351 (0x15f), region = 134  ;;  %s1439_s29 = smov (!%p1071_p0), 0  }
 0x14f   : > { %s1443_s30 = smov (!%p1071_p0), 0  }
 0x155 LB: >> { %v866_v3 = vld [vmem:[%s1437_s28] sm:$0xff]  ;;  %s868_s5 = sadd.s32 1, %s1441_s29  ;;  %s860_s30 = sadd.s32 1, %s1445_s30   ;;  %s1445_s30 = sphi %s1443_s30, %s860_s30   ;;  %s1441_s29 = sphi %s1439_s29, %s1440_s29   ;;  %s1437_s28 = sphi %s1435_s28, %s873_s28   ;;  %s1433_s27 = sphi %s1431_s27, %s874_s27  }
 0x156   : >> { %867 = vst [vmem:[%s1433_s27] sm:$0xff] %v866_v3  ;;  %p869_p1 = scmp.ge.s32.totalorder %s868_s5, %s1342_s26  ;;  %p859_p2 = scmp.ge.s32.totalorder %s860_s30, %s1342_s26 }
 0x158   : >> { %s1798_s5 = smov (%p869_p1, %s868_s5), 0  ;;  %862 = sbr.rel (!%p859_p2) target bundleno = 341 (0x155), region = 140 }
 0x159   : >> { %s1072_s4 = sshll.u32 %s1798_s5, 3  ;;  %s1440_s29 = smov %s1798_s5  }
 0x15a   : >> { %s873_s28 = scalar_lea.vmem %s854_s24, %s1072_s4 [#allocation2]   ;;  %s874_s27 = scalar_lea.vmem %s856_s25, %s1072_s4  }
 0x15f PF: > { %s13_s16 = sadd.s32 1, %s1413_s16   ;;  %s1787_s12 = smov %s1401_s13 }
 0x160   : > { %p10_p3 = scmp.ge.s32.totalorder %s13_s16, 4   ;;  %s1788_s13 = smov %s1511_s22 }
 0x161   : > { %s1789_s14 = smov %s1409_s15  ;;  %s1790_s15 = smov %s1792_s18 }
 0x162   :  { %12 = sbr.rel (!%p10_p3) target bundleno = 3 (0x3), region = 151 }

</bundles_post_ra>
